<compile_context>
chip_gen: v7x
topology: tpu7x:2x2x1
jax: 0.10.0
libtpu: 0.0.40
codegen_flags: <defaults>
</compile_context>

<pallas_src>
import functools

import jax
import jax.numpy as jnp
from jax.experimental import pallas as pl
from jax.experimental.pallas import tpu as pltpu


def _round_up(x, m):
    return pl.cdiv(x, m) * m


def dqn_kernel(x_ref, w1_ref, b1_ref, w2_ref, b2_ref,
               w3_ref, b3_ref, wo_ref, bo_ref, o_ref, *, compute_dtype):
    # x arrives f32; cast to the MXU compute dtype in-kernel (VALU has huge
    # slack here) so the wrapper does not need a separate XLA cast pass.
    x = x_ref[...].astype(compute_dtype)
    # fc1 + ReLU: bf16 operands -> f32 accumulation; bias/ReLU stay f32
    # (keeps the VPU epilogue on the native f32 path -> no bf16 emulation on v5e).
    h = jnp.dot(x, w1_ref[...], preferred_element_type=jnp.float32)
    h = jnp.maximum(h + b1_ref[...], 0.0)
    # fc2 + ReLU
    h = jnp.dot(h.astype(w2_ref.dtype), w2_ref[...],
                preferred_element_type=jnp.float32)
    h = jnp.maximum(h + b2_ref[...], 0.0)
    # fc3 + ReLU
    h = jnp.dot(h.astype(w3_ref.dtype), w3_ref[...],
                preferred_element_type=jnp.float32)
    h = jnp.maximum(h + b3_ref[...], 0.0)
    # out (no activation); lane-dense (padded-to-128) store in o_ref.dtype
    # (bf16 by default -> half the HBM writeback of an f32 slab).
    y = jnp.dot(h.astype(wo_ref.dtype), wo_ref[...],
                preferred_element_type=jnp.float32)
    o_ref[...] = (y + bo_ref[...]).astype(o_ref.dtype)


def dqn_forward(x, params, *, tb=2048, compute_dtype=jnp.bfloat16,
                out_dtype=jnp.bfloat16):
    """x: (B, in_states) f32; params: transposed (in,out) weights + (1,out) biases.

    Returns (B, out_actions) Q-values in out_dtype (bf16 by default to halve
    the padded-output HBM writeback; pass out_dtype=jnp.float32 for exact
    dtype parity with the PyTorch module).
    """
    B, in_states = x.shape
    h1 = params["w1"].shape[1]
    h2 = params["w2"].shape[1]
    h3 = params["w3"].shape[1]
    out_actions = params["wo"].shape[1]
    out_pad = _round_up(out_actions, 128)       # lane-dense stores, no vst.msk

    # ---- batch tiling: balanced tiles, even number of grid steps -----------
    B_pad8 = _round_up(max(B, 1), 8)            # sublane granularity
    num_steps = pl.cdiv(B_pad8, tb)
    if B_pad8 >= 16:
        # At least 2 steps, and an even step count, so ("parallel",) megacore
        # sharding keeps both v7x TensorCores busy; each step is still large
        # (<= tb rows), so per-step overhead (~0.35us) stays amortized.
        num_steps = max(2, num_steps + (num_steps & 1))
    TB = _round_up(pl.cdiv(B_pad8, num_steps), 8)
    B_pad = num_steps * TB                      # padded waste <= 8 rows/step

    # ---- wrapper-side layout plumbing (padding only; casts live in-kernel
    #      for x, weights are cast once since they are reused every step) ----
    x_p = x if B_pad == B else jnp.pad(x, ((0, B_pad - B), (0, 0)))

    w1 = params["w1"].astype(compute_dtype)
    w2 = params["w2"].astype(compute_dtype)
    w3 = params["w3"].astype(compute_dtype)
    wo = params["wo"]
    bo = params["bo"]
    if out_pad != out_actions:
        wo = jnp.pad(wo, ((0, 0), (0, out_pad - out_actions)))
        bo = jnp.pad(bo, ((0, 0), (0, out_pad - out_actions)))
    wo = wo.astype(compute_dtype)
    b1 = params["b1"].astype(jnp.float32)
    b2 = params["b2"].astype(jnp.float32)
    b3 = params["b3"].astype(jnp.float32)
    bo = bo.astype(jnp.float32)

    grid = (num_steps,)

    def resident(arr):
        # Full-array block with a constant index_map: stays resident in VMEM
        # across the whole batch sweep; single-buffered (a constant block
        # never needs a second pipeline buffer).
        return pl.BlockSpec(arr.shape, lambda i: (0,) * arr.ndim,
                            pipeline_mode=pl.Buffered(1))

    in_specs = [
        pl.BlockSpec((TB, in_states), lambda i: (i, 0)),   # x tile (f32)
        resident(w1), resident(b1),
        resident(w2), resident(b2),
        resident(w3), resident(b3),
        resident(wo), resident(bo),
    ]
    out_specs = pl.BlockSpec((TB, out_pad), lambda i: (i, 0))

    flops = 2 * B_pad * (in_states * h1 + h1 * h2 + h2 * h3 + h3 * out_pad)
    bytes_accessed = (
        x_p.size * x_p.dtype.itemsize
        + sum(a.size * a.dtype.itemsize
              for a in (w1, b1, w2, b2, w3, b3, wo, bo))
        + B_pad * out_pad * jnp.dtype(out_dtype).itemsize
    )

    out = pl.pallas_call(
        functools.partial(dqn_kernel, compute_dtype=compute_dtype),
        out_shape=jax.ShapeDtypeStruct((B_pad, out_pad), out_dtype),
        grid=grid,
        in_specs=in_specs,
        out_specs=out_specs,
        compiler_params=pltpu.CompilerParams(
            dimension_semantics=("parallel",)),
        cost_estimate=pl.CostEstimate(
            flops=flops, transcendentals=0, bytes_accessed=bytes_accessed),
    )(x_p, w1, b1, w2, b2, w3, b3, wo, bo)

    # Slice padded rows/columns back out BEFORE any argmax/action selection
    # (padded columns hold zero-bias garbage, padded rows hold bias-only rows).
    # TODO(synk): if the consumer is pure action selection, fuse argmax over
    # the real columns into the kernel instead of emitting the padded Q slab.
    return out[:B, :out_actions]


def init_params(key, in_states, h1, h2, h3, out_actions):
    """Deterministic init (Kaiming-uniform-ish, like nn.Linear default)."""
    dims = [(in_states, h1), (h1, h2), (h2, h3), (h3, out_actions)]
    names = ["1", "2", "3", "o"]
    params = {}
    for (fan_in, fan_out), name in zip(dims, names):
        key, kw, kb = jax.random.split(key, 3)
        bound = 1.0 / jnp.sqrt(jnp.float32(fan_in))
        # stored transposed: (in, out) so y = x @ W + b == PyTorch nn.Linear
        params[f"w{name}"] = jax.random.uniform(
            kw, (fan_in, fan_out), jnp.float32, -bound, bound)
        params[f"b{name}"] = jax.random.uniform(
            kb, (1, fan_out), jnp.float32, -bound, bound)
    return params


def dqn_reference(x, params, compute_dtype=jnp.float32):
    """Pure-JAX reference.  With compute_dtype=bf16 it mirrors the kernel's
    bf16-operand / f32-accumulation arithmetic."""
    def mm(a, w):
        return jnp.dot(a.astype(compute_dtype), w.astype(compute_dtype),
                       preferred_element_type=jnp.float32)
    h = jnp.maximum(mm(x, params["w1"]) + params["b1"], 0.0)
    h = jnp.maximum(mm(h, params["w2"]) + params["b2"], 0.0)
    h = jnp.maximum(mm(h, params["w3"]) + params["b3"], 0.0)
    return mm(h, params["wo"]) + params["bo"]


if __name__ == "__main__":
    key = jax.random.PRNGKey(0)
    in_states, h1, h2, h3, out_actions = 4, 32, 32, 32, 8
    batch = 2

    kx, kp = jax.random.split(key)
    x = jax.random.normal(kx, (batch, in_states), jnp.float32)
    params = init_params(kp, in_states, h1, h2, h3, out_actions)

    out = dqn_forward(x, params)
    out = jax.block_until_ready(out)
    assert out.shape == (batch, out_actions)
    out_f32 = out.astype(jnp.float32)

    # Check against a bf16-matched reference (kernel uses bf16 operands with
    # f32 accumulation; output rounded to bf16).
    ref_bf16 = dqn_reference(x, params, compute_dtype=jnp.bfloat16)
    assert jnp.allclose(out_f32, ref_bf16, atol=2e-2, rtol=2e-2), \
        "mismatch vs bf16-matched reference"

    # Sanity check against the full-f32 PyTorch-equivalent reference
    # (looser tolerance: bf16 weight/activation/output quantization).
    ref_f32 = dqn_reference(x, params, compute_dtype=jnp.float32)
    assert jnp.allclose(out_f32, ref_f32, atol=5e-2, rtol=5e-2), \
        "mismatch vs f32 reference"

    # Exercise the multi-step / padded-batch path (B=20, forced small tile:
    # B_pad8=24 -> 4 balanced steps of 8 rows, 12 padded rows sliced off).
    x2 = jax.random.normal(jax.random.PRNGKey(1), (20, in_states), jnp.float32)
    out2 = jax.block_until_ready(dqn_forward(x2, params, tb=8))
    ref2 = dqn_reference(x2, params, compute_dtype=jnp.bfloat16)
    assert out2.shape == (20, out_actions)
    assert jnp.allclose(out2.astype(jnp.float32), ref2, atol=2e-2, rtol=2e-2), \
        "mismatch vs bf16-matched reference (padded multi-step batch)"

    print("KERNEL_OK")
</pallas_src>

<mosaic_0001>
module attributes {stable_mosaic.version = 11 : i64} {
  func.func @dqn_kernel(%arg0: i32, %arg1: memref<8x4xf32, #tpu.memory_space<vmem>>, %arg2: memref<4x32xbf16, #tpu.memory_space<vmem>>, %arg3: memref<1x32xf32, #tpu.memory_space<vmem>>, %arg4: memref<32x32xbf16, #tpu.memory_space<vmem>>, %arg5: memref<1x32xf32, #tpu.memory_space<vmem>>, %arg6: memref<32x32xbf16, #tpu.memory_space<vmem>>, %arg7: memref<1x32xf32, #tpu.memory_space<vmem>>, %arg8: memref<32x128xbf16, #tpu.memory_space<vmem>>, %arg9: memref<1x128xf32, #tpu.memory_space<vmem>>, %arg10: memref<8x128xbf16, #tpu.memory_space<vmem>>) attributes {dimension_semantics = [#tpu.dimension_semantics<parallel>], iteration_bounds = array<i64: 1>, scalar_prefetch = 0 : i64, scratch_operands = 0 : i64, tpu.core_type = #tpu.core_type<tc>, window_params = [{transform_indices = @transform_0, window_bounds = array<i64: 8, 4>}, {pipeline_mode = #tpu.pipeline_mode<synchronous>, transform_indices = @transform_1, window_bounds = array<i64: 4, 32>}, {pipeline_mode = #tpu.pipeline_mode<synchronous>, transform_indices = @transform_2, window_bounds = array<i64: 1, 32>}, {pipeline_mode = #tpu.pipeline_mode<synchronous>, transform_indices = @transform_3, window_bounds = array<i64: 32, 32>}, {pipeline_mode = #tpu.pipeline_mode<synchronous>, transform_indices = @transform_4, window_bounds = array<i64: 1, 32>}, {pipeline_mode = #tpu.pipeline_mode<synchronous>, transform_indices = @transform_5, window_bounds = array<i64: 32, 32>}, {pipeline_mode = #tpu.pipeline_mode<synchronous>, transform_indices = @transform_6, window_bounds = array<i64: 1, 32>}, {pipeline_mode = #tpu.pipeline_mode<synchronous>, transform_indices = @transform_7, window_bounds = array<i64: 32, 128>}, {pipeline_mode = #tpu.pipeline_mode<synchronous>, transform_indices = @transform_8, window_bounds = array<i64: 1, 128>}, {transform_indices = @transform_9, window_bounds = array<i64: 8, 128>}]} {
    %c0 = arith.constant 0 : index
    %c0_0 = arith.constant 0 : index
    %0 = vector.load %arg1[%c0, %c0_0] : memref<8x4xf32, #tpu.memory_space<vmem>>, vector<8x4xf32>
    %1 = arith.truncf %0 : vector<8x4xf32> to vector<8x4xbf16>
    %c0_1 = arith.constant 0 : index
    %c0_2 = arith.constant 0 : index
    %2 = vector.load %arg2[%c0_1, %c0_2] : memref<4x32xbf16, #tpu.memory_space<vmem>>, vector<4x32xbf16>
    %cst = arith.constant dense<0.000000e+00> : vector<8x32xf32>
    %3 = tpu.matmul %1, %2, %cst {dimension_numbers = #tpu.dot_dimension_numbers<[1], [0], [0], [1], [0, 0, 1, 1], [], []>} : vector<8x4xbf16>, vector<4x32xbf16>, vector<8x32xf32> -> vector<8x32xf32>
    %c0_3 = arith.constant 0 : index
    %c0_4 = arith.constant 0 : index
    %4 = vector.load %arg3[%c0_3, %c0_4] : memref<1x32xf32, #tpu.memory_space<vmem>>, vector<1x32xf32>
    %5 = vector.broadcast %4 : vector<1x32xf32> to vector<8x32xf32>
    %6 = arith.addf %3, %5 : vector<8x32xf32>
    %cst_5 = arith.constant 0.000000e+00 : f32
    %7 = vector.broadcast %cst_5 : f32 to vector<8x32xf32>
    %8 = arith.maximumf %6, %7 : vector<8x32xf32>
    %9 = arith.truncf %8 : vector<8x32xf32> to vector<8x32xbf16>
    %c0_6 = arith.constant 0 : index
    %c0_7 = arith.constant 0 : index
    %10 = vector.load %arg4[%c0_6, %c0_7] : memref<32x32xbf16, #tpu.memory_space<vmem>>, vector<32x32xbf16>
    %cst_8 = arith.constant dense<0.000000e+00> : vector<8x32xf32>
    %11 = tpu.matmul %9, %10, %cst_8 {dimension_numbers = #tpu.dot_dimension_numbers<[1], [0], [0], [1], [0, 0, 1, 1], [], []>} : vector<8x32xbf16>, vector<32x32xbf16>, vector<8x32xf32> -> vector<8x32xf32>
    %c0_9 = arith.constant 0 : index
    %c0_10 = arith.constant 0 : index
    %12 = vector.load %arg5[%c0_9, %c0_10] : memref<1x32xf32, #tpu.memory_space<vmem>>, vector<1x32xf32>
    %13 = vector.broadcast %12 : vector<1x32xf32> to vector<8x32xf32>
    %14 = arith.addf %11, %13 : vector<8x32xf32>
    %cst_11 = arith.constant 0.000000e+00 : f32
    %15 = vector.broadcast %cst_11 : f32 to vector<8x32xf32>
    %16 = arith.maximumf %14, %15 : vector<8x32xf32>
    %17 = arith.truncf %16 : vector<8x32xf32> to vector<8x32xbf16>
    %c0_12 = arith.constant 0 : index
    %c0_13 = arith.constant 0 : index
    %18 = vector.load %arg6[%c0_12, %c0_13] : memref<32x32xbf16, #tpu.memory_space<vmem>>, vector<32x32xbf16>
    %cst_14 = arith.constant dense<0.000000e+00> : vector<8x32xf32>
    %19 = tpu.matmul %17, %18, %cst_14 {dimension_numbers = #tpu.dot_dimension_numbers<[1], [0], [0], [1], [0, 0, 1, 1], [], []>} : vector<8x32xbf16>, vector<32x32xbf16>, vector<8x32xf32> -> vector<8x32xf32>
    %c0_15 = arith.constant 0 : index
    %c0_16 = arith.constant 0 : index
    %20 = vector.load %arg7[%c0_15, %c0_16] : memref<1x32xf32, #tpu.memory_space<vmem>>, vector<1x32xf32>
    %21 = vector.broadcast %20 : vector<1x32xf32> to vector<8x32xf32>
    %22 = arith.addf %19, %21 : vector<8x32xf32>
    %cst_17 = arith.constant 0.000000e+00 : f32
    %23 = vector.broadcast %cst_17 : f32 to vector<8x32xf32>
    %24 = arith.maximumf %22, %23 : vector<8x32xf32>
    %25 = arith.truncf %24 : vector<8x32xf32> to vector<8x32xbf16>
    %c0_18 = arith.constant 0 : index
    %c0_19 = arith.constant 0 : index
    %26 = vector.load %arg8[%c0_18, %c0_19] : memref<32x128xbf16, #tpu.memory_space<vmem>>, vector<32x128xbf16>
    %cst_20 = arith.constant dense<0.000000e+00> : vector<8x128xf32>
    %27 = tpu.matmul %25, %26, %cst_20 {dimension_numbers = #tpu.dot_dimension_numbers<[1], [0], [0], [1], [0, 0, 1, 1], [], []>} : vector<8x32xbf16>, vector<32x128xbf16>, vector<8x128xf32> -> vector<8x128xf32>
    %c0_21 = arith.constant 0 : index
    %c0_22 = arith.constant 0 : index
    %28 = vector.load %arg9[%c0_21, %c0_22] : memref<1x128xf32, #tpu.memory_space<vmem>>, vector<1x128xf32>
    %29 = vector.broadcast %28 : vector<1x128xf32> to vector<8x128xf32>
    %30 = arith.addf %27, %29 : vector<8x128xf32>
    %31 = arith.truncf %30 : vector<8x128xf32> to vector<8x128xbf16>
    %c0_23 = arith.constant 0 : index
    %c0_24 = arith.constant 0 : index
    %32 = vector.load %arg10[%c0_23, %c0_24] : memref<8x128xbf16, #tpu.memory_space<vmem>>, vector<8x128xbf16>
    tpu.vector_store %arg10[%c0_23, %c0_24], %31 {strides = array<i32>} : memref<8x128xbf16, #tpu.memory_space<vmem>>, vector<8x128xbf16>,
    return
  }
  func.func @transform_0(%arg0: i32) -> (i32, i32) {
    %c0_i32 = arith.constant 0 : i32
    %c0_i32_0 = arith.constant 0 : i32
    return %arg0, %c0_i32 : i32, i32
  }
  func.func @transform_1(%arg0: i32) -> (i32, i32) {
    %c0_i32 = arith.constant 0 : i32
    %c0_i32_0 = arith.constant 0 : i32
    %c0_i32_1 = arith.constant 0 : i32
    return %c0_i32, %c0_i32_0 : i32, i32
  }
  func.func @transform_2(%arg0: i32) -> (i32, i32) {
    %c0_i32 = arith.constant 0 : i32
    %c0_i32_0 = arith.constant 0 : i32
    %c0_i32_1 = arith.constant 0 : i32
    return %c0_i32, %c0_i32_0 : i32, i32
  }
  func.func @transform_3(%arg0: i32) -> (i32, i32) {
    %c0_i32 = arith.constant 0 : i32
    %c0_i32_0 = arith.constant 0 : i32
    %c0_i32_1 = arith.constant 0 : i32
    return %c0_i32, %c0_i32_0 : i32, i32
  }
  func.func @transform_4(%arg0: i32) -> (i32, i32) {
    %c0_i32 = arith.constant 0 : i32
    %c0_i32_0 = arith.constant 0 : i32
    %c0_i32_1 = arith.constant 0 : i32
    return %c0_i32, %c0_i32_0 : i32, i32
  }
  func.func @transform_5(%arg0: i32) -> (i32, i32) {
    %c0_i32 = arith.constant 0 : i32
    %c0_i32_0 = arith.constant 0 : i32
    %c0_i32_1 = arith.constant 0 : i32
    return %c0_i32, %c0_i32_0 : i32, i32
  }
  func.func @transform_6(%arg0: i32) -> (i32, i32) {
    %c0_i32 = arith.constant 0 : i32
    %c0_i32_0 = arith.constant 0 : i32
    %c0_i32_1 = arith.constant 0 : i32
    return %c0_i32, %c0_i32_0 : i32, i32
  }
  func.func @transform_7(%arg0: i32) -> (i32, i32) {
    %c0_i32 = arith.constant 0 : i32
    %c0_i32_0 = arith.constant 0 : i32
    %c0_i32_1 = arith.constant 0 : i32
    return %c0_i32, %c0_i32_0 : i32, i32
  }
  func.func @transform_8(%arg0: i32) -> (i32, i32) {
    %c0_i32 = arith.constant 0 : i32
    %c0_i32_0 = arith.constant 0 : i32
    %c0_i32_1 = arith.constant 0 : i32
    return %c0_i32, %c0_i32_0 : i32, i32
  }
  func.func @transform_9(%arg0: i32) -> (i32, i32) {
    %c0_i32 = arith.constant 0 : i32
    %c0_i32_0 = arith.constant 0 : i32
    return %arg0, %c0_i32 : i32, i32
  }
}

</mosaic_0001>

<bundles_post_ra>
// kernel: tpu_custom_call.1
= control target key start
LH: loop header
LB: loop body
LE: loop exit
PB: predicated region body
PF: predicated region fallthrough
CT: control target
= control target key end

     0   :  { %14 = vsyncpa [#allocation3], 0  ;;  %s700_s0 = inlined_call_operand.vmem [shape: f32[8,4], index: 0, kind: input, shape index: {}]   ;;  %s701_s1 = inlined_call_operand.vmem [shape: bf16[4,32], index: 1, kind: input, shape index: {}]   ;;  %s702_s2 = inlined_call_operand.hbm [shape: f32[1,32], index: 2, kind: input, shape index: {}]   ;;  %s703_s3 = inlined_call_operand.vmem [shape: bf16[32,32], index: 3, kind: input, shape index: {}]   ;;  %s704_s4 = inlined_call_operand.hbm [shape: f32[1,32], index: 4, kind: input, shape index: {}]   ;;  %s705_s5 = inlined_call_operand.hbm [shape: bf16[32,32], index: 5, kind: input, shape index: {}]   ;;  %s706_s6 = inlined_call_operand.hbm [shape: f32[1,32], index: 6, kind: input, shape index: {}]   ;;  %s707_s7 = inlined_call_operand.vmem [shape: bf16[32,128], index: 7, kind: input, shape index: {}]   ;;  %s708_s8 = inlined_call_operand.vmem [shape: f32[1,128], index: 8, kind: input, shape index: {}]   ;;  %s709_s9 = inlined_call_operand.hbm [shape: bf16[8,128], index: 9, kind: output, shape index: {}]  }
   0x1   :  { %15 = vsyncpa [#allocation6], 0 }
   0x2   :  { %16 = vsyncpa [#allocation9], 0 }
   0x3   :  { %17 = vsyncpa [#allocation4], 0  ;;  %s553_s30 = smov [#allocation5]   ;;  %s554_s11 = smov [#allocation2]  }
   0x4   :  { %s40_s10 = sshll.u32 %s553_s30, 4  ;;  %s28_s12 = sshll.u32 %s554_s11, 4  ;;  %s41_s10 = int_to_ptr.vmem [resolvable:$true] %s40_s10  ;;  %s29_s12 = int_to_ptr.vmem [resolvable:$true] %s28_s12 }
   0x5   :  { %s435_s15 = scalar_lea.hbm %s704_s4, 16 }
   0x6   :  { %p436_p0 = scmp.ne.s32.totalorder %s704_s4, %s435_s15  ;;  %p439_p1 = scmp.lt.u32.totalorder %s435_s15, %s704_s4 }
   0x8   :  { %p441_p2 = pnand %p439_p1, %p436_p0 }
   0xa   :  { %444 = shalt.err (!%p441_p2)
}
   0xb   :  { %s445_s20 = scalar_lea.vmem %s41_s10, 16  ;;  %s449_s21 = scalar_lea.vmem %s41_s10, 32 }
   0xc   :  { %p446_p3 = scmp.ne.s32.totalorder %s41_s10, %s445_s20  ;;  %p450_p4 = scmp.lt.s32.totalorder %s41_s10, %s41_s10 }
   0xd   :  { %p451_p5 = scmp.lt.s32.totalorder %s449_s21, %s445_s20 }
   0xf   :  { %p452_p6 = por %p451_p5, %p450_p4 }
  0x11   :  { %p453_p7 = pnand %p452_p6, %p446_p3 }
  0x13   :  { %456 = shalt.err (!%p453_p7)
}
  0x14   :  { %43 = dma.hbm_to_vmem [thread:$0]  %s704_s4, 16, %s41_s10, [#allocation6]  }
  0x15   :  { %s457_s26 = scalar_lea.hbm %s702_s2, 16 }
  0x16   :  { %p458_p8 = scmp.ne.s32.totalorder %s702_s2, %s457_s26  ;;  %p461_p9 = scmp.lt.u32.totalorder %s457_s26, %s702_s2 }
  0x18   :  { %p463_p10 = pnand %p461_p9, %p458_p8 }
  0x1a   :  { %466 = shalt.err (!%p463_p10)
}
  0x1b   :  { %s467_s11 = scalar_lea.vmem %s29_s12, 16  ;;  %s471_s13 = scalar_lea.vmem %s29_s12, 32 }
  0x1c   :  { %p468_p11 = scmp.ne.s32.totalorder %s29_s12, %s467_s11  ;;  %p472_p12 = scmp.lt.s32.totalorder %s29_s12, %s29_s12 }
  0x1d   :  { %p473_p13 = scmp.lt.s32.totalorder %s471_s13, %s467_s11 }
  0x1f   :  { %p474_p0 = por %p473_p13, %p472_p12 }
  0x21   :  { %p475_p1 = pnand %p474_p0, %p468_p11 }
  0x23   :  { %478 = shalt.err (!%p475_p1)
}
  0x24   :  { %31 = dma.hbm_to_vmem [thread:$0]  %s702_s2, 16, %s29_s12, [#allocation3]  }
  0x25   :  { %s555_s14 = smov [#allocation7]   ;;  %s479_s18 = scalar_lea.hbm %s705_s5, 256 }
  0x26   :  { %s49_s15 = sshll.u32 %s555_s14, 4  ;;  %p480_p2 = scmp.ne.s32.totalorder %s705_s5, %s479_s18  ;;  %s50_s15 = int_to_ptr.vmem [resolvable:$true] %s49_s15 }
  0x27   :  { %p483_p3 = scmp.lt.u32.totalorder %s479_s18, %s705_s5 }
  0x29   :  { %p485_p4 = pnand %p483_p3, %p480_p2 }
  0x2b   :  { %488 = shalt.err (!%p485_p4)
}
  0x2c   :  { %s489_s23 = scalar_lea.vmem %s50_s15, 256  ;;  %p494_p6 = scmp.lt.s32.totalorder %s50_s15, %s50_s15 }
  0x2d   :  { %p490_p5 = scmp.ne.s32.totalorder %s50_s15, %s489_s23  ;;  %p495_p7 = scmp.lt.s32.totalorder %s489_s23, %s489_s23 }
  0x2f   :  { %p496_p8 = por %p495_p7, %p494_p6 }
  0x31   :  { %p497_p9 = pnand %p496_p8, %p490_p5 }
  0x33   :  { %500 = shalt.err (!%p497_p9)
}
  0x34   :  { %s556_s2 = smov 64   ;;  %s557_s12 = smov 4  }
  0x35   :  { %55 = dma.hbm_to_vmem [thread:$0]  %s705_s5, 256, %s50_s15, [#allocation6], %s556_s2, %s556_s2, %s557_s12  }
  0x36   :  { %s558_s26 = smov [#allocation8]   ;;  %s501_s30 = scalar_lea.hbm %s706_s6, 16 }
  0x37   :  { %s62_s27 = sshll.u32 %s558_s26, 4  ;;  %p502_p10 = scmp.ne.s32.totalorder %s706_s6, %s501_s30  ;;  %s63_s27 = int_to_ptr.vmem [resolvable:$true] %s62_s27 }
  0x38   :  { %p505_p11 = scmp.lt.u32.totalorder %s501_s30, %s706_s6 }
  0x3a   :  { %p507_p12 = pnand %p505_p11, %p502_p10 }
  0x3c   :  { %510 = shalt.err (!%p507_p12)
}
  0x3d   :  { %s511_s14 = scalar_lea.vmem %s63_s27, 16  ;;  %s515_s5 = scalar_lea.vmem %s63_s27, 32 }
  0x3e   :  { %p512_p13 = scmp.ne.s32.totalorder %s63_s27, %s511_s14  ;;  %p516_p0 = scmp.lt.s32.totalorder %s63_s27, %s63_s27 }
  0x3f   :  { %p517_p1 = scmp.lt.s32.totalorder %s515_s5, %s511_s14 }
  0x41   :  { %p518_p2 = por %p517_p1, %p516_p0 }
  0x43   :  { %p519_p3 = pnand %p518_p2, %p512_p13 }
  0x45   :  { %522 = shalt.err (!%p519_p3)
}
  0x46   :  { %65 = dma.hbm_to_vmem [thread:$0]  %s706_s6, 16, %s63_s27, [#allocation9]  }
  0x47   :  { %545 = dma.done.wait [#allocation3], 16  }
  0x48   :  { %546 = vsyncadd [#allocation3], 4294967280 }
  0x49   :  { %547 = dma.done.wait [#allocation6], 272  }
  0x4a   :  { %548 = vsyncadd [#allocation6], 4294967024 }
  0x4b   :  { %549 = dma.done.wait [#allocation9], 16  }
  0x4c   :  { %550 = vsyncadd [#allocation9], 4294967280  ;;  %v559_v0 = vmov 0.0   ;;  %vm560_vm0 = vmmov 0   ;;  %vm97_vm1 = vcmask 1041408   ;;  %v83_v2 = vld [vmem:[%s700_s0] sm:$0xff] }
  0x4d   :  { %390 = vmatprep.subr.bf16.mxu0 %v559_v0  ;;  %392 = vmatprep.mubr.msk.bf16.mxu0 %vm560_vm0, %v559_v0  ;;  %v85_v1 = vld [vmem:[%s701_s1] sm:$0x3]  ;;  %v84_v4 = vpack.c.bf16 %v83_v2, %v83_v2  ;;  %vm93_vm2 = vcmask 31744   ;;  %v430_v6 = vld [vmem:[%s703_s3 + $0x8] sm:$0xff]   ;;  %vm166_vm3 = vcmask 261120   ;;  %v432_v16 = vld [vmem:[#allocation7 + $0x8] sm:$0xff]  }
  0x4e   :  { %396 = vmatprep.subr.bf16.mxu1 %v559_v0  ;;  %400 = vmatprep.mubr.msk.bf16.mxu1 %vm560_vm0, %v559_v0  ;;  %v99_v3 = vsel %vm97_vm1, %v85_v1, 0  ;;  %v429_v5 = vld [vmem:[%s703_s3] sm:$0xff]   ;;  %v431_v7 = vld [vmem:[#allocation7] sm:$0xff]   ;;  %v365_v8 = vld [vmem:[#allocation2] ss:$0 sm:$0xff]  ;;  %s561_s25 = smov [#allocation10]  }
  0x4f   :  { %391 = vmatpush3.bf16.msra.mxu0 %v99_v3  ;;  %397 = vmatpush3.bf16.msra.mxu1 %v429_v5  ;;  %v433_v17 = vld [vmem:[%s707_s7] sm:$0xff]   ;;  %v367_v18 = vld [vmem:[#allocation5] ss:$0 sm:$0xff]  ;;  %v371_v27 = vld [vmem:[#allocation8] ss:$0 sm:$0xff]  ;;  %s354_s26 = sshll.u32 %s561_s25, 4  ;;  %s355_s26 = int_to_ptr.vmem [resolvable:$true] %s354_s26 }
  0x50   :  { %404 = vmatprep.subr.bf16.mxu0 %v559_v0  ;;  %398 = vmatprep.subr.bf16.mxu1 %v559_v0  ;;  %v434_v26 = vld [vmem:[%s707_s7 + $0x8] sm:$0xff]   ;;  %v375_v35 = vld [vmem:[%s708_s8] ss:$0 sm:$0xff]  ;;  %s523_s7 = scalar_lea.vmem %s355_s26, 64  ;;  %p528_p5 = scmp.lt.s32.totalorder %s355_s26, %s355_s26 }
  0x51   :  { %p524_p4 = scmp.ne.s32.totalorder %s355_s26, %s523_s7  ;;  %p529_p6 = scmp.lt.s32.totalorder %s523_s7, %s523_s7 }
  0x52   :  { %393 = vmatmul.mubr.msk.bf16.vlgmr.msra.gmra.mrb[0].mxu0 %vm93_vm2, %v84_v4 }
  0x53   :  { %408 = vmatprep.mubr.msk.bf16.mxu0 %vm560_vm0, %v559_v0  ;;  %399 = vmatpush3.bf16.msra.mxu1 %v430_v6  ;;  %p530_p7 = por %p529_p6, %p528_p5 }
  0x54   :  { %412 = vmatprep.subr.bf16.mxu1 %v559_v0  ;;  %405 = vmatpush3.bf16.msra.mxu0 %v431_v7 }
  0x55   :  { %406 = vmatprep.subr.bf16.mxu0 %v559_v0  ;;  %p531_p8 = pnand %p530_p7, %p524_p4 }
  0x58   :  { %407 = vmatpush3.bf16.msra.mxu0 %v432_v16 }
 0x125   :  { %v135_v9 = vpop.f32.mrb[0].mxu0 }
 0x126   :  { %v136_v10 = vadd.f32 %v365_v8, %v135_v9  ;;  %v394_v11 = vpop.f32.mrb[1].mxu0 }
 0x127   :  { %v138_v12 = vpop.f32.mrb[2].mxu0 }
 0x128   :  { %v141_v13 = vmax.f32 %v136_v10, 0.0  ;;  %v395_v14 = vpop.f32.mrb[3].mxu0 }
 0x12a   :  { %v142_v15 = vpack.c.bf16 %v141_v13, %v141_v13 }
 0x12c   :  { %401 = vmatmul.mubr.msk.bf16.vlgmr.msra.gmra.mrb[0].mxu1 %vm166_vm3, %v142_v15 }
 0x12d   :  { %416 = vmatprep.mubr.msk.bf16.mxu1 %vm560_vm0, %v559_v0  ;;  %413 = vmatpush3.bf16.msra.mxu1 %v433_v17 }
 0x12e   :  { %414 = vmatprep.subr.bf16.mxu1 %v559_v0 }
 0x131   :  { %415 = vmatpush3.bf16.msra.mxu1 %v434_v26 }
 0x1ff   :  { %v204_v19 = vpop.f32.mrb[0].mxu1 }
 0x200   :  { %v205_v20 = vadd.f32 %v367_v18, %v204_v19  ;;  %v402_v21 = vpop.f32.mrb[1].mxu1 }
 0x201   :  { %v207_v22 = vpop.f32.mrb[2].mxu1 }
 0x202   :  { %v210_v23 = vmax.f32 %v205_v20, 0.0  ;;  %v403_v24 = vpop.f32.mrb[3].mxu1 }
 0x204   :  { %v211_v25 = vpack.c.bf16 %v210_v23, %v210_v23 }
 0x206   :  { %409 = vmatmul.mubr.msk.bf16.vlgmr.msra.gmra.mrb[4].mxu0 %vm166_vm3, %v211_v25 }
 0x2d9   :  { %v272_v28 = vpop.f32.mrb[4].mxu0 }
 0x2da   :  { %v273_v29 = vadd.f32 %v371_v27, %v272_v28  ;;  %v410_v30 = vpop.f32.mrb[5].mxu0 }
 0x2db   :  { %v275_v31 = vpop.f32.mrb[6].mxu0 }
 0x2dc   :  { %v278_v32 = vmax.f32 %v273_v29, 0.0  ;;  %v411_v33 = vpop.f32.mrb[7].mxu0 }
 0x2de   :  { %v279_v34 = vpack.c.bf16 %v278_v32, %v278_v32 }
 0x2e0   :  { %417 = vmatmul.mubr.msk.bf16.vlgmr.msra.gmra.mrb[4].mxu1 %vm166_vm3, %v279_v34 }
 0x3b3   :  { %v340_v36 = vpop.f32.mrb[4].mxu1 }
 0x3b4   :  { %v341_v37 = vadd.f32 %v375_v35, %v340_v36  ;;  %v418_v38 = vpop.f32.mrb[5].mxu1 }
 0x3b5   :  { %v343_v39 = vpop.f32.mrb[6].mxu1 }
 0x3b6   :  { %v346_v40 = vpack.c.bf16 %v341_v37, %v341_v37  ;;  %v419_v41 = vpop.f32.mrb[7].mxu1 }
 0x3b8   :  { %347 = vst [vmem:[#allocation10] sm:$0xf] %v346_v40 }
 0x3b9   :  { %534 = shalt.err (!%p531_p8)
}
 0x3ba   :  { %s535_s8 = scalar_lea.hbm %s709_s9, 64 }
 0x3bb   :  { %p536_p9 = scmp.ne.s32.totalorder %s709_s9, %s535_s8  ;;  %p539_p10 = scmp.lt.u32.totalorder %s535_s8, %s709_s9 }
 0x3bd   :  { %p541_p11 = pnand %p539_p10, %p536_p9 }
 0x3bf   :  { %544 = shalt.err (!%p541_p11)
}
 0x3c0   :  { %357 = dma.vmem_to_hbm [thread:$0]  %s355_s26, 64, %s709_s9, [#allocation4]  }
 0x3c1   :  { %551 = dma.done.wait [#allocation4], 64  }
 0x3c2   :  { %552 = vsyncadd [#allocation4], 4294967232 }
 0x3c3   :  { %361 = vsyncpa [#allocation3], 1 }
 0x3c4   :  { %362 = vsyncpa [#allocation6], 1 }
 0x3c5   :  { %363 = vsyncpa [#allocation9], 1 }
 0x3c6   :  { %364 = vsyncpa [#allocation4], 1 }

</bundles_post_ra>
